<compile_context>
chip_gen: v5e
topology: v5e:2x2
jax: 0.10.0
libtpu: 0.0.40
codegen_flags: <defaults>
</compile_context>

<pallas_src>
import functools

import jax
import jax.numpy as jnp
from jax.experimental import pallas as pl
from jax.experimental.pallas import tpu as pltpu


HIDDEN = (512, 256, 128, 64)
_LANE = 128        # lane width: hidden/output feature dims padded to this
_SUBLANE = 16      # bf16 sublane packing: batch tile / fc1 input padded to this
_TILE_B_MAX = 512  # max rows per grid step (two full 256-wide MXU passes)
_SPLIT_B = 512     # at/above this batch, use >=2 tiles so v7x's 2nd TC has work


def _round_up(x, m):
    return (x + m - 1) // m * m


def _bf16_epilogue_default():
    # bf16 bias+PReLU epilogue only on chips with a bf16 VALU (v6e / v7x).
    try:
        kind = jax.devices()[0].device_kind.lower()
        return ("v6" in kind) or ("v7" in kind)
    except Exception:
        return True


def kmpnet_mlp_kernel(alpha_ref,                       # SMEM: (4,) PReLU slopes
                      x_ref,                           # VMEM: (TILE_B, F_in_pad) bf16
                      w1_ref, b1_ref,
                      w2_ref, b2_ref,
                      w3_ref, b3_ref,
                      w4_ref, b4_ref,
                      w5_ref, b5_ref,
                      out_ref):                        # VMEM: (TILE_B, OUT_pad) f32
    """Fused 5-layer MLP: Linear -> PReLU (x4, Dropout = identity) -> Linear."""

    def linear_prelu(h_bf16, w_ref, b_ref, alpha):
        # MXU matmul in bf16 with f32 accumulation.
        acc = jnp.dot(h_bf16, w_ref[...], preferred_element_type=jnp.float32)
        # Bias + PReLU in the bias dtype (bf16 on v6e/v7x, f32 on v5e).
        acc = acc.astype(b_ref.dtype) + b_ref[...]
        a = alpha.astype(acc.dtype)
        acc = jnp.where(acc > 0, acc, a * acc)
        return acc.astype(jnp.bfloat16)

    h = x_ref[...]                                     # already bf16
    h = linear_prelu(h, w1_ref, b1_ref, alpha_ref[0])  # fc1 (F_in -> 512)
    h = linear_prelu(h, w2_ref, b2_ref, alpha_ref[1])  # fc2 (512 -> 256)
    h = linear_prelu(h, w3_ref, b3_ref, alpha_ref[2])  # fc3 (256 -> 128)
    h = linear_prelu(h, w4_ref, b4_ref, alpha_ref[3])  # fc4 (128 -> 64 padded)
    # fc5 (64 padded -> output padded); bias add / output in f32.
    acc = jnp.dot(h, w5_ref[...], preferred_element_type=jnp.float32) + b5_ref[...]
    out_ref[...] = acc.astype(out_ref.dtype)


def init_kmpnet_mlp_params(key, mlp_input_size, output_size, dtype=jnp.float32):
    """Deterministic logical (unpadded, f32) params, PyTorch-Linear-like init."""
    dims = (mlp_input_size,) + HIDDEN + (output_size,)
    params = {}
    keys = jax.random.split(key, 2 * (len(dims) - 1))
    for i in range(len(dims) - 1):
        fan_in, fan_out = dims[i], dims[i + 1]
        bound = 1.0 / jnp.sqrt(jnp.float32(fan_in))
        # Weights stored [in, out] (transpose of PyTorch layout).
        params[f"w{i+1}"] = jax.random.uniform(
            keys[2 * i], (fan_in, fan_out), dtype, -bound, bound)
        params[f"b{i+1}"] = jax.random.uniform(
            keys[2 * i + 1], (1, fan_out), dtype, -bound, bound)
    # PReLU slopes: PyTorch default init = 0.25, one scalar per PReLU layer.
    params["alphas"] = jnp.full((4,), 0.25, dtype=jnp.float32)
    return params


def pack_kmpnet_params(params, mlp_input_size, output_size, bf16_epilogue=True):
    """Pad feature dims; weights -> bf16; biases bf16 (fc1-4) / f32 (fc5)."""
    dims = (mlp_input_size,) + HIDDEN + (output_size,)
    # fc1 input only needs sublane (16) alignment -- avoids 4x lane-pad of x;
    # hidden/output dims are padded to full 128 lanes (lane-dense output store).
    padded = (_round_up(mlp_input_size, _SUBLANE),) + tuple(
        _round_up(d, _LANE) for d in dims[1:])
    packed = {"alphas": params["alphas"].astype(jnp.float32)}
    for i in range(5):
        hidden_layer = i < 4
        b_dtype = jnp.bfloat16 if (bf16_epilogue and hidden_layer) else jnp.float32
        w = params[f"w{i+1}"].astype(jnp.bfloat16)
        b = params[f"b{i+1}"].astype(b_dtype)
        packed[f"w{i+1}"] = jnp.pad(
            w, ((0, padded[i] - dims[i]), (0, padded[i + 1] - dims[i + 1])))
        packed[f"b{i+1}"] = jnp.pad(b, ((0, 0), (0, padded[i + 1] - dims[i + 1])))
    return packed


def _choose_batch_tiling(batch):
    """Balanced batch tiles (multiple of 16), <=512 rows, >=2 tiles for big batches."""
    n_tiles = max(1, pl.cdiv(batch, _TILE_B_MAX))
    if batch >= _SPLIT_B:
        n_tiles = max(n_tiles, 2)   # keep both v7x TensorCores busy
    tile_b = _round_up(pl.cdiv(batch, n_tiles), _SUBLANE)
    return tile_b, n_tiles * tile_b


@functools.partial(jax.jit, static_argnames=("output_size",))
def kmpnet_forward(packed_params, x, z=None, *, output_size):
    """KMPNet.forward: optional latent cat (glue) + batch-tiled fused MLP kernel."""
    if z is not None:
        mlp_in = jnp.concatenate([z, x], axis=1)   # torch.cat((z, x), 1)
    else:
        mlp_in = x
    batch, feat = mlp_in.shape

    f_in_pad = packed_params["w1"].shape[0]
    out_pad = packed_params["w5"].shape[1]
    assert feat <= f_in_pad, "mlp_in width exceeds packed fc1 input width"

    tile_b, b_pad = _choose_batch_tiling(batch)
    grid = (b_pad // tile_b,)

    # Activations fed to the kernel in bf16; zero padding is exact (padded
    # rows/cols contribute nothing) and is sliced off below.
    x_p = jnp.pad(mlp_in.astype(jnp.bfloat16),
                  ((0, b_pad - batch), (0, f_in_pad - feat)))

    def _const2(i):
        return (0, 0)

    in_specs = [
        # PReLU slopes: tiny scalar table, resident in SMEM for all grid steps.
        pl.BlockSpec(memory_space=pltpu.MemorySpace.SMEM),
        # Activations: tiled over the batch axis.
        pl.BlockSpec((tile_b, f_in_pad), lambda i: (i, 0)),
    ]
    operands = [packed_params["alphas"], x_p]
    flops = 0
    bytes_accessed = x_p.size * x_p.dtype.itemsize + b_pad * out_pad * 4
    for li in range(1, 6):
        w = packed_params[f"w{li}"]
        b = packed_params[f"b{li}"]
        # Constant index maps -> weights/biases stay VMEM-resident across steps.
        in_specs.append(pl.BlockSpec(w.shape, _const2))
        in_specs.append(pl.BlockSpec(b.shape, _const2))
        operands += [w, b]
        flops += 2 * b_pad * w.shape[0] * w.shape[1]
        bytes_accessed += w.size * w.dtype.itemsize + b.size * b.dtype.itemsize

    out = pl.pallas_call(
        kmpnet_mlp_kernel,
        out_shape=jax.ShapeDtypeStruct((b_pad, out_pad), jnp.float32),
        grid_spec=pltpu.PrefetchScalarGridSpec(
            num_scalar_prefetch=0,
            grid=grid,
            in_specs=in_specs,
            out_specs=pl.BlockSpec((tile_b, out_pad), lambda i: (i, 0)),
        ),
        compiler_params=pltpu.CompilerParams(
            dimension_semantics=("parallel",)),
        cost_estimate=pl.CostEstimate(
            flops=flops, transcendentals=0, bytes_accessed=bytes_accessed),
    )(*operands)
    return out[:batch, :output_size]


def _reference_forward(params, x, z=None, *, bf16_epilogue=True):
    """Pure-JAX reference mirroring the kernel's bf16-weight / f32-accum math."""
    h = jnp.concatenate([z, x], axis=1) if z is not None else x
    h = h.astype(jnp.bfloat16)
    ep_dtype = jnp.bfloat16 if bf16_epilogue else jnp.float32
    for i in range(4):
        w = params[f"w{i+1}"].astype(jnp.bfloat16)
        acc = jnp.dot(h, w, preferred_element_type=jnp.float32)
        acc = acc.astype(ep_dtype) + params[f"b{i+1}"].astype(ep_dtype)
        a = params["alphas"][i].astype(ep_dtype)
        acc = jnp.where(acc > 0, acc, a * acc)
        h = acc.astype(jnp.bfloat16)
    w5 = params["w5"].astype(jnp.bfloat16)
    out = (jnp.dot(h, w5, preferred_element_type=jnp.float32)
           + params["b5"].astype(jnp.float32))
    return out


if __name__ == "__main__":
    # Small, forward-consistent shapes:
    #   batch=2, mlp_input_size=32, output_size=8 (obs=None -> mlp_in = x).
    batch = 2
    mlp_input_size = 32
    output_size = 8

    bf16_epilogue = _bf16_epilogue_default()

    key = jax.random.PRNGKey(0)
    k_params, k_x = jax.random.split(key)
    params = init_kmpnet_mlp_params(k_params, mlp_input_size, output_size)
    packed = pack_kmpnet_params(params, mlp_input_size, output_size,
                                bf16_epilogue=bf16_epilogue)
    x = jax.random.normal(k_x, (batch, mlp_input_size), dtype=jnp.float32)

    out = kmpnet_forward(packed, x, None, output_size=output_size)
    out = jax.block_until_ready(out)

    ref = _reference_forward(params, x, None, bf16_epilogue=bf16_epilogue)
    assert out.shape == (batch, output_size)
    # Tolerance reflects the intentional bf16-weight / bf16-epilogue math
    # (vs PyTorch f32); the reference mirrors the same quantization.
    assert jnp.allclose(out, ref, atol=1e-2, rtol=1e-2), "mismatch vs reference"

    print("KERNEL_OK")
</pallas_src>

<mosaic_0001>
module attributes {stable_mosaic.version = 11 : i64} {
  func.func @kmpnet_mlp_kernel(%arg0: i32, %arg1: memref<4xf32, #tpu.memory_space<smem>>, %arg2: memref<16x32xbf16, #tpu.memory_space<vmem>>, %arg3: memref<32x512xbf16, #tpu.memory_space<vmem>>, %arg4: memref<1x512xf32, #tpu.memory_space<vmem>>, %arg5: memref<512x256xbf16, #tpu.memory_space<vmem>>, %arg6: memref<1x256xf32, #tpu.memory_space<vmem>>, %arg7: memref<256x128xbf16, #tpu.memory_space<vmem>>, %arg8: memref<1x128xf32, #tpu.memory_space<vmem>>, %arg9: memref<128x128xbf16, #tpu.memory_space<vmem>>, %arg10: memref<1x128xf32, #tpu.memory_space<vmem>>, %arg11: memref<128x128xbf16, #tpu.memory_space<vmem>>, %arg12: memref<1x128xf32, #tpu.memory_space<vmem>>, %arg13: memref<16x128xf32, #tpu.memory_space<vmem>>) attributes {dimension_semantics = [#tpu.dimension_semantics<parallel>], iteration_bounds = array<i64: 1>, scalar_prefetch = 0 : i64, scratch_operands = 0 : i64, tpu.core_type = #tpu.core_type<tc>, window_params = [{transform_indices = @transform_0, window_bounds = array<i64: 4>}, {transform_indices = @transform_1, window_bounds = array<i64: 16, 32>}, {pipeline_mode = #tpu.pipeline_mode<synchronous>, transform_indices = @transform_2, window_bounds = array<i64: 32, 512>}, {pipeline_mode = #tpu.pipeline_mode<synchronous>, transform_indices = @transform_3, window_bounds = array<i64: 1, 512>}, {pipeline_mode = #tpu.pipeline_mode<synchronous>, transform_indices = @transform_4, window_bounds = array<i64: 512, 256>}, {pipeline_mode = #tpu.pipeline_mode<synchronous>, transform_indices = @transform_5, window_bounds = array<i64: 1, 256>}, {pipeline_mode = #tpu.pipeline_mode<synchronous>, transform_indices = @transform_6, window_bounds = array<i64: 256, 128>}, {pipeline_mode = #tpu.pipeline_mode<synchronous>, transform_indices = @transform_7, window_bounds = array<i64: 1, 128>}, {pipeline_mode = #tpu.pipeline_mode<synchronous>, transform_indices = @transform_8, window_bounds = array<i64: 128, 128>}, {pipeline_mode = #tpu.pipeline_mode<synchronous>, transform_indices = @transform_9, window_bounds = array<i64: 1, 128>}, {pipeline_mode = #tpu.pipeline_mode<synchronous>, transform_indices = @transform_10, window_bounds = array<i64: 128, 128>}, {pipeline_mode = #tpu.pipeline_mode<synchronous>, transform_indices = @transform_11, window_bounds = array<i64: 1, 128>}, {transform_indices = @transform_12, window_bounds = array<i64: 16, 128>}]} {
    %c0 = arith.constant 0 : index
    %c0_0 = arith.constant 0 : index
    %0 = vector.load %arg2[%c0, %c0_0] : memref<16x32xbf16, #tpu.memory_space<vmem>>, vector<16x32xbf16>
    %c0_1 = arith.constant 0 : index
    %1 = memref.load %arg1[%c0_1] : memref<4xf32, #tpu.memory_space<smem>>
    %c0_2 = arith.constant 0 : index
    %c0_3 = arith.constant 0 : index
    %2 = vector.load %arg3[%c0_2, %c0_3] : memref<32x512xbf16, #tpu.memory_space<vmem>>, vector<32x512xbf16>
    %cst = arith.constant dense<0.000000e+00> : vector<16x512xf32>
    %3 = tpu.matmul %0, %2, %cst {dimension_numbers = #tpu.dot_dimension_numbers<[1], [0], [0], [1], [0, 0, 1, 1], [], []>} : vector<16x32xbf16>, vector<32x512xbf16>, vector<16x512xf32> -> vector<16x512xf32>
    %c0_4 = arith.constant 0 : index
    %c0_5 = arith.constant 0 : index
    %4 = vector.load %arg4[%c0_4, %c0_5] : memref<1x512xf32, #tpu.memory_space<vmem>>, vector<1x512xf32>
    %5 = vector.broadcast %4 : vector<1x512xf32> to vector<16x512xf32>
    %6 = arith.addf %3, %5 : vector<16x512xf32>
    %cst_6 = arith.constant 0.000000e+00 : f32
    %7 = vector.broadcast %cst_6 : f32 to vector<16x512xf32>
    %8 = arith.cmpf ogt, %6, %7 : vector<16x512xf32>
    %9 = vector.broadcast %1 : f32 to vector<16x512xf32>
    %10 = arith.mulf %9, %6 : vector<16x512xf32>
    %11 = arith.select %8, %6, %10 : vector<16x512xi1>, vector<16x512xf32>
    %12 = arith.truncf %11 : vector<16x512xf32> to vector<16x512xbf16>
    %c1 = arith.constant 1 : index
    %13 = memref.load %arg1[%c1] : memref<4xf32, #tpu.memory_space<smem>>
    %c0_7 = arith.constant 0 : index
    %c0_8 = arith.constant 0 : index
    %14 = vector.load %arg5[%c0_7, %c0_8] : memref<512x256xbf16, #tpu.memory_space<vmem>>, vector<512x256xbf16>
    %cst_9 = arith.constant dense<0.000000e+00> : vector<16x256xf32>
    %15 = tpu.matmul %12, %14, %cst_9 {dimension_numbers = #tpu.dot_dimension_numbers<[1], [0], [0], [1], [0, 0, 1, 1], [], []>} : vector<16x512xbf16>, vector<512x256xbf16>, vector<16x256xf32> -> vector<16x256xf32>
    %c0_10 = arith.constant 0 : index
    %c0_11 = arith.constant 0 : index
    %16 = vector.load %arg6[%c0_10, %c0_11] : memref<1x256xf32, #tpu.memory_space<vmem>>, vector<1x256xf32>
    %17 = vector.broadcast %16 : vector<1x256xf32> to vector<16x256xf32>
    %18 = arith.addf %15, %17 : vector<16x256xf32>
    %cst_12 = arith.constant 0.000000e+00 : f32
    %19 = vector.broadcast %cst_12 : f32 to vector<16x256xf32>
    %20 = arith.cmpf ogt, %18, %19 : vector<16x256xf32>
    %21 = vector.broadcast %13 : f32 to vector<16x256xf32>
    %22 = arith.mulf %21, %18 : vector<16x256xf32>
    %23 = arith.select %20, %18, %22 : vector<16x256xi1>, vector<16x256xf32>
    %24 = arith.truncf %23 : vector<16x256xf32> to vector<16x256xbf16>
    %c2 = arith.constant 2 : index
    %25 = memref.load %arg1[%c2] : memref<4xf32, #tpu.memory_space<smem>>
    %c0_13 = arith.constant 0 : index
    %c0_14 = arith.constant 0 : index
    %26 = vector.load %arg7[%c0_13, %c0_14] : memref<256x128xbf16, #tpu.memory_space<vmem>>, vector<256x128xbf16>
    %cst_15 = arith.constant dense<0.000000e+00> : vector<16x128xf32>
    %27 = tpu.matmul %24, %26, %cst_15 {dimension_numbers = #tpu.dot_dimension_numbers<[1], [0], [0], [1], [0, 0, 1, 1], [], []>} : vector<16x256xbf16>, vector<256x128xbf16>, vector<16x128xf32> -> vector<16x128xf32>
    %c0_16 = arith.constant 0 : index
    %c0_17 = arith.constant 0 : index
    %28 = vector.load %arg8[%c0_16, %c0_17] : memref<1x128xf32, #tpu.memory_space<vmem>>, vector<1x128xf32>
    %29 = vector.broadcast %28 : vector<1x128xf32> to vector<16x128xf32>
    %30 = arith.addf %27, %29 : vector<16x128xf32>
    %cst_18 = arith.constant 0.000000e+00 : f32
    %31 = vector.broadcast %cst_18 : f32 to vector<16x128xf32>
    %32 = arith.cmpf ogt, %30, %31 : vector<16x128xf32>
    %33 = vector.broadcast %25 : f32 to vector<16x128xf32>
    %34 = arith.mulf %33, %30 : vector<16x128xf32>
    %35 = arith.select %32, %30, %34 : vector<16x128xi1>, vector<16x128xf32>
    %36 = arith.truncf %35 : vector<16x128xf32> to vector<16x128xbf16>
    %c3 = arith.constant 3 : index
    %37 = memref.load %arg1[%c3] : memref<4xf32, #tpu.memory_space<smem>>
    %c0_19 = arith.constant 0 : index
    %c0_20 = arith.constant 0 : index
    %38 = vector.load %arg9[%c0_19, %c0_20] : memref<128x128xbf16, #tpu.memory_space<vmem>>, vector<128x128xbf16>
    %cst_21 = arith.constant dense<0.000000e+00> : vector<16x128xf32>
    %39 = tpu.matmul %36, %38, %cst_21 {dimension_numbers = #tpu.dot_dimension_numbers<[1], [0], [0], [1], [0, 0, 1, 1], [], []>} : vector<16x128xbf16>, vector<128x128xbf16>, vector<16x128xf32> -> vector<16x128xf32>
    %c0_22 = arith.constant 0 : index
    %c0_23 = arith.constant 0 : index
    %40 = vector.load %arg10[%c0_22, %c0_23] : memref<1x128xf32, #tpu.memory_space<vmem>>, vector<1x128xf32>
    %41 = vector.broadcast %40 : vector<1x128xf32> to vector<16x128xf32>
    %42 = arith.addf %39, %41 : vector<16x128xf32>
    %cst_24 = arith.constant 0.000000e+00 : f32
    %43 = vector.broadcast %cst_24 : f32 to vector<16x128xf32>
    %44 = arith.cmpf ogt, %42, %43 : vector<16x128xf32>
    %45 = vector.broadcast %37 : f32 to vector<16x128xf32>
    %46 = arith.mulf %45, %42 : vector<16x128xf32>
    %47 = arith.select %44, %42, %46 : vector<16x128xi1>, vector<16x128xf32>
    %48 = arith.truncf %47 : vector<16x128xf32> to vector<16x128xbf16>
    %c0_25 = arith.constant 0 : index
    %c0_26 = arith.constant 0 : index
    %49 = vector.load %arg11[%c0_25, %c0_26] : memref<128x128xbf16, #tpu.memory_space<vmem>>, vector<128x128xbf16>
    %cst_27 = arith.constant dense<0.000000e+00> : vector<16x128xf32>
    %50 = tpu.matmul %48, %49, %cst_27 {dimension_numbers = #tpu.dot_dimension_numbers<[1], [0], [0], [1], [0, 0, 1, 1], [], []>} : vector<16x128xbf16>, vector<128x128xbf16>, vector<16x128xf32> -> vector<16x128xf32>
    %c0_28 = arith.constant 0 : index
    %c0_29 = arith.constant 0 : index
    %51 = vector.load %arg12[%c0_28, %c0_29] : memref<1x128xf32, #tpu.memory_space<vmem>>, vector<1x128xf32>
    %52 = vector.broadcast %51 : vector<1x128xf32> to vector<16x128xf32>
    %53 = arith.addf %50, %52 : vector<16x128xf32>
    %c0_30 = arith.constant 0 : index
    %c0_31 = arith.constant 0 : index
    %54 = vector.load %arg13[%c0_30, %c0_31] : memref<16x128xf32, #tpu.memory_space<vmem>>, vector<16x128xf32>
    tpu.vector_store %arg13[%c0_30, %c0_31], %53 {strides = array<i32>} : memref<16x128xf32, #tpu.memory_space<vmem>>, vector<16x128xf32>,
    return
  }
  func.func @transform_0(%arg0: i32) -> i32 {
    %c0_i32 = arith.constant 0 : i32
    %c0_i32_0 = arith.constant 0 : i32
    return %c0_i32 : i32
  }
  func.func @transform_1(%arg0: i32) -> (i32, i32) {
    %c0_i32 = arith.constant 0 : i32
    %c0_i32_0 = arith.constant 0 : i32
    return %arg0, %c0_i32 : i32, i32
  }
  func.func @transform_2(%arg0: i32) -> (i32, i32) {
    %c0_i32 = arith.constant 0 : i32
    %c0_i32_0 = arith.constant 0 : i32
    %c0_i32_1 = arith.constant 0 : i32
    return %c0_i32, %c0_i32_0 : i32, i32
  }
  func.func @transform_3(%arg0: i32) -> (i32, i32) {
    %c0_i32 = arith.constant 0 : i32
    %c0_i32_0 = arith.constant 0 : i32
    %c0_i32_1 = arith.constant 0 : i32
    return %c0_i32, %c0_i32_0 : i32, i32
  }
  func.func @transform_4(%arg0: i32) -> (i32, i32) {
    %c0_i32 = arith.constant 0 : i32
    %c0_i32_0 = arith.constant 0 : i32
    %c0_i32_1 = arith.constant 0 : i32
    return %c0_i32, %c0_i32_0 : i32, i32
  }
  func.func @transform_5(%arg0: i32) -> (i32, i32) {
    %c0_i32 = arith.constant 0 : i32
    %c0_i32_0 = arith.constant 0 : i32
    %c0_i32_1 = arith.constant 0 : i32
    return %c0_i32, %c0_i32_0 : i32, i32
  }
  func.func @transform_6(%arg0: i32) -> (i32, i32) {
    %c0_i32 = arith.constant 0 : i32
    %c0_i32_0 = arith.constant 0 : i32
    %c0_i32_1 = arith.constant 0 : i32
    return %c0_i32, %c0_i32_0 : i32, i32
  }
  func.func @transform_7(%arg0: i32) -> (i32, i32) {
    %c0_i32 = arith.constant 0 : i32
    %c0_i32_0 = arith.constant 0 : i32
    %c0_i32_1 = arith.constant 0 : i32
    return %c0_i32, %c0_i32_0 : i32, i32
  }
  func.func @transform_8(%arg0: i32) -> (i32, i32) {
    %c0_i32 = arith.constant 0 : i32
    %c0_i32_0 = arith.constant 0 : i32
    %c0_i32_1 = arith.constant 0 : i32
    return %c0_i32, %c0_i32_0 : i32, i32
  }
  func.func @transform_9(%arg0: i32) -> (i32, i32) {
    %c0_i32 = arith.constant 0 : i32
    %c0_i32_0 = arith.constant 0 : i32
    %c0_i32_1 = arith.constant 0 : i32
    return %c0_i32, %c0_i32_0 : i32, i32
  }
  func.func @transform_10(%arg0: i32) -> (i32, i32) {
    %c0_i32 = arith.constant 0 : i32
    %c0_i32_0 = arith.constant 0 : i32
    %c0_i32_1 = arith.constant 0 : i32
    return %c0_i32, %c0_i32_0 : i32, i32
  }
  func.func @transform_11(%arg0: i32) -> (i32, i32) {
    %c0_i32 = arith.constant 0 : i32
    %c0_i32_0 = arith.constant 0 : i32
    %c0_i32_1 = arith.constant 0 : i32
    return %c0_i32, %c0_i32_0 : i32, i32
  }
  func.func @transform_12(%arg0: i32) -> (i32, i32) {
    %c0_i32 = arith.constant 0 : i32
    %c0_i32_0 = arith.constant 0 : i32
    return %arg0, %c0_i32 : i32, i32
  }
}

</mosaic_0001>

<bundles_post_ra>
// kernel: kmpnet_forward.1
= control target key start
LH: loop header
LB: loop body
LE: loop exit
PB: predicated region body
PF: predicated region fallthrough
CT: control target
= control target key end

     0   :  { %17 = vsyncpa [#allocation4], 0  ;;  %s1968_s0 = inlined_call_operand.vmem [shape: f32[4], index: 0, kind: input, shape index: {}]   ;;  %s1969_s1 = inlined_call_operand.vmem [shape: bf16[16,32], index: 1, kind: input, shape index: {}]   ;;  %s1970_s2 = inlined_call_operand.hbm [shape: bf16[32,512], index: 2, kind: input, shape index: {}]   ;;  %s1971_s3 = inlined_call_operand.vmem [shape: f32[1,512], index: 3, kind: input, shape index: {}]   ;;  %s1972_s4 = inlined_call_operand.hbm [shape: bf16[512,256], index: 4, kind: input, shape index: {}]   ;;  %s1973_s5 = inlined_call_operand.vmem [shape: f32[1,256], index: 5, kind: input, shape index: {}]   ;;  %s1974_s6 = inlined_call_operand.hbm [shape: bf16[256,128], index: 6, kind: input, shape index: {}]   ;;  %s1975_s7 = inlined_call_operand.vmem [shape: f32[1,128], index: 7, kind: input, shape index: {}]   ;;  %s1976_s8 = inlined_call_operand.hbm [shape: bf16[128,128], index: 8, kind: input, shape index: {}]   ;;  %s1977_s9 = inlined_call_operand.vmem [shape: f32[1,128], index: 9, kind: input, shape index: {}]   ;;  %s1978_s10 = inlined_call_operand.hbm [shape: bf16[128,128], index: 10, kind: input, shape index: {}]   ;;  %s1979_s11 = inlined_call_operand.vmem [shape: f32[1,128], index: 11, kind: input, shape index: {}]   ;;  %s1980_s12 = inlined_call_operand.vmem [shape: f32[16,128], index: 12, kind: output, shape index: {}]  }
   0x1   :  { %18 = vsyncpa [#allocation3], 0 }
   0x2   :  { %19 = vsyncpa [#allocation7], 0  ;;  %s51_s23 = sshll.u32 %s1972_s4, 4  ;;  %s52_s23 = int_to_ptr.hbm [resolvable:$true] %s51_s23 }
   0x3   :  { %20 = vsyncpa [#allocation10], 0  ;;  %s1845_s24 = smov [#allocation6]   ;;  %s1846_s26 = smov 128  }
   0x4   :  { %s53_s25 = sshll.u32 %s1845_s24, 4  ;;  %s1847_s27 = smov 8   ;;  %s54_s25 = int_to_ptr.vmem [resolvable:$true] %s53_s25 }
   0x5   :  { %59 = dma.hbm_to_vmem [thread:$0]  %s52_s23, 8192, %s54_s25, [#allocation7], %s1846_s26, %s1846_s26, %s1847_s27  }
   0x6   :  { %s81_s30 = sshll.u32 %s1976_s8, 4  ;;  %s1848_s13 = smov [#allocation9]   ;;  %s82_s30 = int_to_ptr.hbm [resolvable:$true] %s81_s30 }
   0x7   :  { %s83_s14 = sshll.u32 %s1848_s13, 4  ;;  %s26_s17 = sshll.u32 %s1968_s0, 4  ;;  %s84_s14 = int_to_ptr.vmem [resolvable:$true] %s83_s14  ;;  %s27_s17 = int_to_ptr.vmem [resolvable:$true] %s26_s17 }
   0x8   :  { %s1849_s4 = smov 64   ;;  %s1850_s18 = smov 4  }
   0x9   :  { %89 = dma.hbm_to_vmem [thread:$0]  %s82_s30, 1024, %s84_s14, [#allocation10], %s1849_s4, %s1849_s4, %s1850_s18  }
   0xa   :  { %s36_s21 = sshll.u32 %s1970_s2, 4  ;;  %s1851_s22 = smov [#allocation2]   ;;  %s37_s21 = int_to_ptr.hbm [resolvable:$true] %s36_s21 }
   0xb   :  { %29 = dma.vmem_to_smem %s27_s17, 16, %s1851_s22, [#allocation4]  }
   0xc   :  { %s1852_s8 = smov [#allocation5]   ;;  %s1853_s24 = smov 256  }
   0xd   :  { %s38_s23 = sshll.u32 %s1852_s8, 4  ;;  %s1854_s25 = smov 16   ;;  %s39_s23 = int_to_ptr.vmem [resolvable:$true] %s38_s23 }
   0xe   :  { %44 = dma.hbm_to_vmem [thread:$0]  %s37_s21, 1024, %s39_s23, [#allocation3], %s1853_s24, %s1853_s24, %s1854_s25  }
   0xf   :  { %s66_s27 = sshll.u32 %s1974_s6, 4  ;;  %s1855_s28 = smov [#allocation8]   ;;  %s67_s27 = int_to_ptr.hbm [resolvable:$true] %s66_s27 }
  0x10   :  { %s68_s29 = sshll.u32 %s1855_s28, 4  ;;  %s96_s2 = sshll.u32 %s1978_s10, 4  ;;  %s69_s29 = int_to_ptr.vmem [resolvable:$true] %s68_s29  ;;  %s97_s2 = int_to_ptr.hbm [resolvable:$true] %s96_s2 }
  0x11   :  { %74 = dma.hbm_to_vmem [thread:$0]  %s67_s27, 2048, %s69_s29, [#allocation7], %s1849_s4, %s1849_s4, %s1850_s18  }
  0x12   :  { %s1856_s14 = smov [#allocation11]  }
  0x13   :  { %s98_s15 = sshll.u32 %s1856_s14, 4  ;;  %s99_s15 = int_to_ptr.vmem [resolvable:$true] %s98_s15 }
  0x14   :  { %104 = dma.hbm_to_vmem [thread:$0]  %s97_s2, 1024, %s99_s15, [#allocation10], %s1849_s4, %s1849_s4, %s1850_s18  }
  0x15   :  { %1837 = dma.done.wait [#allocation4], 16  }
  0x16   :  { %1838 = vsyncadd [#allocation4], 4294967280 }
  0x17   :  { %1839 = dma.done.wait [#allocation3], 1024  }
  0x18   :  { %1840 = vsyncadd [#allocation3], 4294966272 }
  0x19   :  { %1841 = dma.done.wait [#allocation7], 10240  }
  0x1a   :  { %1842 = vsyncadd [#allocation7], 4294957056 }
  0x1b   :  { %1843 = dma.done.wait [#allocation10], 2048  }
  0x1c   :  { %1844 = vsyncadd [#allocation10], 4294965248 }
  0x1d   :  { %131 = sfence }
  0x1e   :  { %v1180_v0 = vld [vmem:[#allocation5 + $0x20] sm:$0xf]  ;;  %v1592_v1 = vld [vmem:[#allocation5 + $0x2c] sm:$0xf0]  ;;  %v1590_v2 = vld [vmem:[#allocation5 + $0x24] sm:$0xf] }
  0x1f   :  { %v1181_v3 = vor.u32 %v1592_v1, %v1180_v0  ;;  %v1182_v4 = vld [vmem:[#allocation5 + $0x30] sm:$0xf0]  ;;  %v1188_v5 = vld [vmem:[#allocation5 + $0x28] sm:$0xf]  ;;  %v1593_v6 = vld [vmem:[#allocation5 + $0x34] sm:$0xf0] }
  0x20   :  { %v1185_v7 = vor.u32 %v1590_v2, %v1182_v4  ;;  %v1189_v8 = vor.u32 %v1593_v6, %v1188_v5  ;;  %v1591_v9 = vld [vmem:[#allocation5 + $0x2c] sm:$0xf]  ;;  %v1190_v10 = vld [vmem:[#allocation5 + $0x38] sm:$0xf0]  ;;  %v1164_v11 = vld [vmem:[#allocation5] sm:$0xf] }
  0x21   :  { %209 = vmatpush.bf16.msra.mxu0 %v1181_v3  ;;  %v1193_v12 = vor.u32 %v1591_v9, %v1190_v10  ;;  %v1588_v13 = vld [vmem:[#allocation5 + $0xc] sm:$0xf0]  ;;  %v1586_v14 = vld [vmem:[#allocation5 + $0x4] sm:$0xf]  ;;  %v1166_v15 = vld [vmem:[#allocation5 + $0x10] sm:$0xf0] }
  0x22   :  { %223 = vmatpush.bf16.msra.mxu1 %v1185_v7  ;;  %237 = vmatpush.bf16.msra.mxu2 %v1189_v8  ;;  %v1165_v16 = vor.u32 %v1588_v13, %v1164_v11  ;;  %v1169_v17 = vor.u32 %v1586_v14, %v1166_v15  ;;  %v1172_v18 = vld [vmem:[#allocation5 + $0x8] sm:$0xf]  ;;  %v1589_v19 = vld [vmem:[#allocation5 + $0x14] sm:$0xf0]  ;;  %v1587_v20 = vld [vmem:[#allocation5 + $0xc] sm:$0xf] }
  0x23   :  { %251 = vmatpush.bf16.msra.mxu3 %v1193_v12  ;;  %v1173_v21 = vor.u32 %v1589_v19, %v1172_v18  ;;  %v1174_v22 = vld [vmem:[#allocation5 + $0x18] sm:$0xf0]  ;;  %v1585_v23 = vld [vmem:[%s1969_s1] sm:$0xff]  ;;  %vm199_vm0 = vcmask 261120   ;;  %v1257_v24 = vld [vmem:[#allocation6 + $0x70] sm:$0xf] }
  0x24   :  { %v1177_v25 = vor.u32 %v1587_v20, %v1174_v22  ;;  %v1609_v26 = vld [vmem:[#allocation6 + $0x74] sm:$0xf0]  ;;  %v1321_v27 = vld [vmem:[#allocation6 + $0xf0] sm:$0xf]  ;;  %v1249_v31 = vld [vmem:[#allocation6 + $0x60] sm:$0xf] }
  0x25   :  { %v1625_v28 = vld [vmem:[#allocation6 + $0xf4] sm:$0xf0]  ;;  %210 = vmatpush.bf16.msra.mxu0 %v1165_v16  ;;  %v1258_v29 = vor.u32 %v1609_v26, %v1257_v24  ;;  %v1607_v32 = vld [vmem:[#allocation6 + $0x64] sm:$0xf0]  ;;  %v1313_v33 = vld [vmem:[#allocation6 + $0xe0] sm:$0xf] }
  0x26   :  { %v1322_v30 = vor.u32 %v1625_v28, %v1321_v27  ;;  %224 = vmatpush.bf16.msra.mxu1 %v1169_v17  ;;  %238 = vmatpush.bf16.msra.mxu2 %v1173_v21  ;;  %v1623_v34 = vld [vmem:[#allocation6 + $0xe4] sm:$0xf0]  ;;  %v1385_v35 = vld [vmem:[#allocation6 + $0x170] sm:$0xf]  ;;  %v1641_v36 = vld [vmem:[#allocation6 + $0x174] sm:$0xf0]  ;;  %v1250_v37 = vor.u32 %v1607_v32, %v1249_v31 }
  0x27   :  { %252 = vmatpush.bf16.msra.mxu3 %v1177_v25  ;;  %v1386_v38 = vor.u32 %v1641_v36, %v1385_v35  ;;  %v1449_v39 = vld [vmem:[#allocation6 + $0x1f0] sm:$0xf]  ;;  %v1657_v40 = vld [vmem:[#allocation6 + $0x1f4] sm:$0xf0]  ;;  %v1314_v42 = vor.u32 %v1623_v34, %v1313_v33  ;;  %v1377_v47 = vld [vmem:[#allocation6 + $0x160] sm:$0xf] }
  0x28   :  { %v1241_v41 = vld [vmem:[#allocation6 + $0x50] sm:$0xf]  ;;  %1194 = vmatmul.msk.bf16.vlgmr.msra.gmra.mxu0 %vm199_vm0, %v1585_v23  ;;  %v1450_v43 = vor.u32 %v1657_v40, %v1449_v39  ;;  %v1605_v44 = vld [vmem:[#allocation6 + $0x54] sm:$0xf0]  ;;  %v1639_v48 = vld [vmem:[#allocation6 + $0x164] sm:$0xf0] }
  0x29   :  { %679 = vmatpush.bf16.msrb.mxu0 %v1258_v29  ;;  %v1305_v45 = vld [vmem:[#allocation6 + $0xd0] sm:$0xf]  ;;  %v1621_v46 = vld [vmem:[#allocation6 + $0xd4] sm:$0xf0]  ;;  %1195 = vmatmul.msk.bf16.vlgmr.msra.gmra.mxu1 %vm199_vm0, %v1585_v23  ;;  %v1441_v49 = vld [vmem:[#allocation6 + $0x1e0] sm:$0xf]  ;;  %v1378_v50 = vor.u32 %v1639_v48, %v1377_v47  ;;  %v1242_v52 = vor.u32 %v1605_v44, %v1241_v41 }
  0x2a   :  { %693 = vmatpush.bf16.msrb.mxu1 %v1322_v30  ;;  %1196 = vmatmul.msk.bf16.vlgmr.msra.gmra.mxu2 %vm199_vm0, %v1585_v23  ;;  %v1655_v51 = vld [vmem:[#allocation6 + $0x1e4] sm:$0xf0]  ;;  %v1233_v54 = vld [vmem:[#allocation6 + $0x40] sm:$0xf]  ;;  %v1369_v56 = vld [vmem:[#allocation6 + $0x150] sm:$0xf]  ;;  %v1306_v57 = vor.u32 %v1621_v46, %v1305_v45 }
  0x2b   :  { %1197 = vmatmul.msk.bf16.vlgmr.msra.gmra.mxu3 %vm199_vm0, %v1585_v23  ;;  %707 = vmatpush.bf16.msrb.mxu2 %v1386_v38  ;;  %v1442_v53 = vor.u32 %v1655_v51, %v1441_v49  ;;  %v1603_v55 = vld [vmem:[#allocation6 + $0x44] sm:$0xf0]  ;;  %v1637_v58 = vld [vmem:[#allocation6 + $0x154] sm:$0xf0]  ;;  %v1433_v59 = vld [vmem:[#allocation6 + $0x1d0] sm:$0xf] }
  0x2c   :  { %721 = vmatpush.bf16.msrb.mxu3 %v1450_v43  ;;  %v1653_v60 = vld [vmem:[#allocation6 + $0x1d4] sm:$0xf0]  ;;  %v1297_v61 = vld [vmem:[#allocation6 + $0xc0] sm:$0xf]  ;;  %v1619_v62 = vld [vmem:[#allocation6 + $0xc4] sm:$0xf0]  ;;  %v1370_v63 = vor.u32 %v1637_v58, %v1369_v56  ;;  %v1234_v0 = vor.u32 %v1603_v55, %v1233_v54 }
  0x2d   :  { %680 = vmatpush.bf16.msrb.mxu0 %v1250_v37  ;;  %v1434_v1 = vor.u32 %v1653_v60, %v1433_v59  ;;  %v1225_v2 = vld [vmem:[#allocation6 + $0x30] sm:$0xf]  ;;  %v1361_v3 = vld [vmem:[#allocation6 + $0x140] sm:$0xf]  ;;  %v1635_v4 = vld [vmem:[#allocation6 + $0x144] sm:$0xf0]  ;;  %v1298_v5 = vor.u32 %v1619_v62, %v1297_v61 }
  0x2e   :  { %694 = vmatpush.bf16.msrb.mxu1 %v1314_v42  ;;  %v1601_v6 = vld [vmem:[#allocation6 + $0x34] sm:$0xf0]  ;;  %v1425_v7 = vld [vmem:[#allocation6 + $0x1c0] sm:$0xf]  ;;  %v1651_v8 = vld [vmem:[#allocation6 + $0x1c4] sm:$0xf0]  ;;  %v1362_v11 = vor.u32 %v1635_v4, %v1361_v3 }
  0x2f   :  { %708 = vmatpush.bf16.msrb.mxu2 %v1378_v50  ;;  %v1289_v9 = vld [vmem:[#allocation6 + $0xb0] sm:$0xf]  ;;  %v1617_v10 = vld [vmem:[#allocation6 + $0xb4] sm:$0xf0]  ;;  %v1226_v12 = vor.u32 %v1601_v6, %v1225_v2  ;;  %v1426_v13 = vor.u32 %v1651_v8, %v1425_v7  ;;  %v1217_v14 = vld [vmem:[#allocation6 + $0x20] sm:$0xf] }
  0x30   :  { %722 = vmatpush.bf16.msrb.mxu3 %v1442_v53  ;;  %v1353_v15 = vld [vmem:[#allocation6 + $0x130] sm:$0xf]  ;;  %v1633_v16 = vld [vmem:[#allocation6 + $0x134] sm:$0xf0]  ;;  %v1290_v17 = vor.u32 %v1617_v10, %v1289_v9  ;;  %v1599_v18 = vld [vmem:[#allocation6 + $0x24] sm:$0xf0] }
  0x31   :  { %681 = vmatpush.bf16.msrb.mxu0 %v1242_v52  ;;  %v1417_v19 = vld [vmem:[#allocation6 + $0x1b0] sm:$0xf]  ;;  %v1649_v20 = vld [vmem:[#allocation6 + $0x1b4] sm:$0xf0]  ;;  %v1281_v21 = vld [vmem:[#allocation6 + $0xa0] sm:$0xf]  ;;  %v1354_v23 = vor.u32 %v1633_v16, %v1353_v15  ;;  %v1218_v24 = vor.u32 %v1599_v18, %v1217_v14 }
  0x32   :  { %695 = vmatpush.bf16.msrb.mxu1 %v1306_v57  ;;  %v1615_v22 = vld [vmem:[#allocation6 + $0xa4] sm:$0xf0]  ;;  %v1418_v25 = vor.u32 %v1649_v20, %v1417_v19  ;;  %v1209_v26 = vld [vmem:[#allocation6 + $0x10] sm:$0xf]  ;;  %v1345_v27 = vld [vmem:[#allocation6 + $0x120] sm:$0xf] }
  0x33   :  { %709 = vmatpush.bf16.msrb.mxu2 %v1370_v63  ;;  %v1631_v28 = vld [vmem:[#allocation6 + $0x124] sm:$0xf0]  ;;  %v1282_v29 = vor.u32 %v1615_v22, %v1281_v21  ;;  %v1597_v30 = vld [vmem:[#allocation6 + $0x14] sm:$0xf0]  ;;  %v1409_v31 = vld [vmem:[#allocation6 + $0x1a0] sm:$0xf] }
  0x34   :  { %723 = vmatpush.bf16.msrb.mxu3 %v1434_v1  ;;  %v1647_v32 = vld [vmem:[#allocation6 + $0x1a4] sm:$0xf0]  ;;  %v1273_v33 = vld [vmem:[#allocation6 + $0x90] sm:$0xf]  ;;  %v1613_v34 = vld [vmem:[#allocation6 + $0x94] sm:$0xf0]  ;;  %v1346_v35 = vor.u32 %v1631_v28, %v1345_v27  ;;  %v1210_v36 = vor.u32 %v1597_v30, %v1209_v26 }
  0x35   :  { %682 = vmatpush.bf16.msrb.mxu0 %v1234_v0  ;;  %v1410_v37 = vor.u32 %v1647_v32, %v1409_v31  ;;  %v1274_v38 = vor.u32 %v1613_v34, %v1273_v33  ;;  %v1201_v39 = vld [vmem:[#allocation6] sm:$0xf]  ;;  %v1595_v40 = vld [vmem:[#allocation6 + $0x4] sm:$0xf0]  ;;  %v1608_v44 = vld [vmem:[#allocation6 + $0x74] sm:$0xf] }
  0x36   :  { %696 = vmatpush.bf16.msrb.mxu1 %v1298_v5  ;;  %v1265_v41 = vld [vmem:[#allocation6 + $0x80] sm:$0xf]  ;;  %v1202_v42 = vor.u32 %v1595_v40, %v1201_v39  ;;  %v1611_v43 = vld [vmem:[#allocation6 + $0x84] sm:$0xf0]  ;;  %v1259_v45 = vld [vmem:[#allocation6 + $0x78] sm:$0xf0] }
  0x37   :  { %710 = vmatpush.bf16.msrb.mxu2 %v1362_v11  ;;  %v1266_v46 = vor.u32 %v1611_v43, %v1265_v41  ;;  %v1262_v47 = vor.u32 %v1608_v44, %v1259_v45  ;;  %v1624_v48 = vld [vmem:[#allocation6 + $0xf4] sm:$0xf]  ;;  %v1323_v49 = vld [vmem:[#allocation6 + $0xf8] sm:$0xf0]  ;;  %v1337_v50 = vld [vmem:[#allocation6 + $0x110] sm:$0xf] }
  0x38   :  { %724 = vmatpush.bf16.msrb.mxu3 %v1426_v13  ;;  %v1326_v51 = vor.u32 %v1624_v48, %v1323_v49  ;;  %v1629_v52 = vld [vmem:[#allocation6 + $0x114] sm:$0xf0]  ;;  %v1401_v53 = vld [vmem:[#allocation6 + $0x190] sm:$0xf]  ;;  %v1606_v57 = vld [vmem:[#allocation6 + $0x64] sm:$0xf] }
  0x39   :  { %683 = vmatpush.bf16.msrb.mxu0 %v1226_v12  ;;  %v1645_v54 = vld [vmem:[#allocation6 + $0x194] sm:$0xf0]  ;;  %v1338_v55 = vor.u32 %v1629_v52, %v1337_v50  ;;  %v1251_v58 = vld [vmem:[#allocation6 + $0x68] sm:$0xf0]  ;;  %v1622_v59 = vld [vmem:[#allocation6 + $0xe4] sm:$0xf] }
  0x3a   :  { %697 = vmatpush.bf16.msrb.mxu1 %v1290_v17  ;;  %v1402_v56 = vor.u32 %v1645_v54, %v1401_v53  ;;  %v1254_v60 = vor.u32 %v1606_v57, %v1251_v58  ;;  %v1315_v61 = vld [vmem:[#allocation6 + $0xe8] sm:$0xf0]  ;;  %v1329_v62 = vld [vmem:[#allocation6 + $0x100] sm:$0xf]  ;;  %v1627_v0 = vld [vmem:[#allocation6 + $0x104] sm:$0xf0] }
  0x3b   :  { %711 = vmatpush.bf16.msrb.mxu2 %v1354_v23  ;;  %v1318_v63 = vor.u32 %v1622_v59, %v1315_v61  ;;  %v1393_v1 = vld [vmem:[#allocation6 + $0x180] sm:$0xf]  ;;  %v1643_v2 = vld [vmem:[#allocation6 + $0x184] sm:$0xf0]  ;;  %v1330_v3 = vor.u32 %v1627_v0, %v1329_v62  ;;  %v1640_v5 = vld [vmem:[#allocation6 + $0x174] sm:$0xf] }
  0x3c   :  { %725 = vmatpush.bf16.msrb.mxu3 %v1418_v25  ;;  %v1394_v4 = vor.u32 %v1643_v2, %v1393_v1  ;;  %v1387_v6 = vld [vmem:[#allocation6 + $0x178] sm:$0xf0]  ;;  %v1656_v8 = vld [vmem:[#allocation6 + $0x1f4] sm:$0xf]  ;;  %v1638_v17 = vld [vmem:[#allocation6 + $0x164] sm:$0xf] }
  0x3d   :  { %684 = vmatpush.bf16.msrb.mxu0 %v1218_v24  ;;  %v1390_v7 = vor.u32 %v1640_v5, %v1387_v6  ;;  %v1451_v9 = vld [vmem:[#allocation6 + $0x1f8] sm:$0xf0]  ;;  %v1604_v10 = vld [vmem:[#allocation6 + $0x54] sm:$0xf]  ;;  %v1379_v18 = vld [vmem:[#allocation6 + $0x168] sm:$0xf0] }
  0x3e   :  { %698 = vmatpush.bf16.msrb.mxu1 %v1282_v29  ;;  %v1454_v11 = vor.u32 %v1656_v8, %v1451_v9  ;;  %v1243_v12 = vld [vmem:[#allocation6 + $0x58] sm:$0xf0]  ;;  %v1620_v13 = vld [vmem:[#allocation6 + $0xd4] sm:$0xf]  ;;  %v1654_v19 = vld [vmem:[#allocation6 + $0x1e4] sm:$0xf]  ;;  %v1382_v20 = vor.u32 %v1638_v17, %v1379_v18 }
  0x3f   :  { %712 = vmatpush.bf16.msrb.mxu2 %v1346_v35  ;;  %v1307_v14 = vld [vmem:[#allocation6 + $0xd8] sm:$0xf0]  ;;  %v1246_v15 = vor.u32 %v1604_v10, %v1243_v12  ;;  %v1443_v21 = vld [vmem:[#allocation6 + $0x1e8] sm:$0xf0]  ;;  %v1602_v23 = vld [vmem:[#allocation6 + $0x44] sm:$0xf] }
  0x40   :  { %726 = vmatpush.bf16.msrb.mxu3 %v1410_v37  ;;  %v1310_v16 = vor.u32 %v1620_v13, %v1307_v14  ;;  %v1446_v22 = vor.u32 %v1654_v19, %v1443_v21  ;;  %v1235_v24 = vld [vmem:[#allocation6 + $0x48] sm:$0xf0]  ;;  %v1618_v25 = vld [vmem:[#allocation6 + $0xc4] sm:$0xf]  ;;  %v1636_v29 = vld [vmem:[#allocation6 + $0x154] sm:$0xf] }
  0x41   :  { %685 = vmatpush.bf16.msrb.mxu0 %v1210_v36  ;;  %v1238_v26 = vor.u32 %v1602_v23, %v1235_v24  ;;  %v1299_v27 = vld [vmem:[#allocation6 + $0xc8] sm:$0xf0]  ;;  %v1371_v30 = vld [vmem:[#allocation6 + $0x158] sm:$0xf0]  ;;  %v1652_v31 = vld [vmem:[#allocation6 + $0x1d4] sm:$0xf] }
  0x42   :  { %699 = vmatpush.bf16.msrb.mxu1 %v1274_v38  ;;  %v1302_v28 = vor.u32 %v1618_v25, %v1299_v27  ;;  %v1374_v32 = vor.u32 %v1636_v29, %v1371_v30  ;;  %v1435_v33 = vld [vmem:[#allocation6 + $0x1d8] sm:$0xf0]  ;;  %v1600_v35 = vld [vmem:[#allocation6 + $0x34] sm:$0xf]  ;;  %v1634_v41 = vld [vmem:[#allocation6 + $0x144] sm:$0xf] }
  0x43   :  { %713 = vmatpush.bf16.msrb.mxu2 %v1338_v55  ;;  %v1438_v34 = vor.u32 %v1652_v31, %v1435_v33  ;;  %v1227_v36 = vld [vmem:[#allocation6 + $0x38] sm:$0xf0]  ;;  %v1616_v37 = vld [vmem:[#allocation6 + $0xb4] sm:$0xf]  ;;  %v1650_v43 = vld [vmem:[#allocation6 + $0x1c4] sm:$0xf] }
  0x44   :  { %727 = vmatpush.bf16.msrb.mxu3 %v1402_v56  ;;  %v1230_v38 = vor.u32 %v1600_v35, %v1227_v36  ;;  %v1291_v39 = vld [vmem:[#allocation6 + $0xb8] sm:$0xf0]  ;;  %v1427_v45 = vld [vmem:[#allocation6 + $0x1c8] sm:$0xf0]  ;;  %v1614_v50 = vld [vmem:[#allocation6 + $0xa4] sm:$0xf] }
  0x45   :  { %686 = vmatpush.bf16.msrb.mxu0 %v1202_v42  ;;  %v1294_v40 = vor.u32 %v1616_v37, %v1291_v39  ;;  %v1363_v42 = vld [vmem:[#allocation6 + $0x148] sm:$0xf0]  ;;  %v1430_v48 = vor.u32 %v1650_v43, %v1427_v45  ;;  %v1632_v53 = vld [vmem:[#allocation6 + $0x134] sm:$0xf]  ;;  %v1355_v54 = vld [vmem:[#allocation6 + $0x138] sm:$0xf0] }
  0x46   :  { %700 = vmatpush.bf16.msrb.mxu1 %v1266_v46  ;;  %v1366_v44 = vor.u32 %v1634_v41, %v1363_v42  ;;  %v1598_v46 = vld [vmem:[#allocation6 + $0x24] sm:$0xf]  ;;  %v1648_v55 = vld [vmem:[#allocation6 + $0x1b4] sm:$0xf]  ;;  %v1358_v56 = vor.u32 %v1632_v53, %v1355_v54  ;;  %v1419_v57 = vld [vmem:[#allocation6 + $0x1b8] sm:$0xf0] }
  0x47   :  { %714 = vmatpush.bf16.msrb.mxu2 %v1330_v3  ;;  %v1422_v58 = vor.u32 %v1648_v55, %v1419_v57  ;;  %v1596_v59 = vld [vmem:[#allocation6 + $0x14] sm:$0xf]  ;;  %v1630_v0 = vld [vmem:[#allocation6 + $0x124] sm:$0xf]  ;;  %v1347_v1 = vld [vmem:[#allocation6 + $0x128] sm:$0xf0] }
  0x48   :  { %728 = vmatpush.bf16.msrb.mxu3 %v1394_v4  ;;  %v1612_v61 = vld [vmem:[#allocation6 + $0x94] sm:$0xf]  ;;  %v1350_v3 = vor.u32 %v1630_v0, %v1347_v1  ;;  %v1646_v4 = vld [vmem:[#allocation6 + $0x1a4] sm:$0xf]  ;;  %v1411_v5 = vld [vmem:[#allocation6 + $0x1a8] sm:$0xf0] }
  0x49   :  { %735 = vmatpush.bf16.msra.mxu0 %v1262_v47  ;;  %v1219_v47 = vld [vmem:[#allocation6 + $0x28] sm:$0xf0]  ;;  %v1594_v6 = vld [vmem:[#allocation6 + $0x4] sm:$0xf]  ;;  %v1628_v13 = vld [vmem:[#allocation6 + $0x114] sm:$0xf] }
  0x4a   :  { %749 = vmatpush.bf16.msra.mxu1 %v1326_v51  ;;  %v1222_v49 = vor.u32 %v1598_v46, %v1219_v47  ;;  %v1283_v51 = vld [vmem:[#allocation6 + $0xa8] sm:$0xf0]  ;;  %v1610_v9 = vld [vmem:[#allocation6 + $0x84] sm:$0xf]  ;;  %v1339_v14 = vld [vmem:[#allocation6 + $0x118] sm:$0xf0] }
  0x4b   :  { %763 = vmatpush.bf16.msra.mxu2 %v1390_v7  ;;  %v1286_v52 = vor.u32 %v1614_v50, %v1283_v51  ;;  %v1414_v7 = vor.u32 %v1646_v4, %v1411_v5  ;;  %v1203_v8 = vld [vmem:[#allocation6 + $0x8] sm:$0xf0]  ;;  %v1403_v17 = vld [vmem:[#allocation6 + $0x198] sm:$0xf0]  ;;  %s135_s17 = sld [smem:[#allocation2]]  ;;  %v1342_v18 = vor.u32 %v1628_v13, %v1339_v14  ;;  %v1664_v4 = vld [vmem:[#allocation8 + $0x30] sm:$0xff] }
  0x4c   :  { %777 = vmatpush.bf16.msra.mxu3 %v1454_v11  ;;  %v1267_v10 = vld [vmem:[#allocation6 + $0x88] sm:$0xf0]  ;;  %v1206_v11 = vor.u32 %v1594_v6, %v1203_v8  ;;  %v1626_v24 = vld [vmem:[#allocation6 + $0x104] sm:$0xf]  ;;  %v1665_v50 = vld [vmem:[#allocation8 + $0x38] sm:$0xff]  ;;  %s1198_s18 = sld [smem:[#allocation2 + $0x1]] }
  0x4d   :  { %736 = vmatpush.bf16.msra.mxu0 %v1254_v60  ;;  %v1211_v60 = vld [vmem:[#allocation6 + $0x18] sm:$0xf0]  ;;  %v1270_v12 = vor.u32 %v1610_v9, %v1267_v10  ;;  %v1331_v25 = vld [vmem:[#allocation6 + $0x108] sm:$0xf0]  ;;  %v1662_v6 = vld [vmem:[#allocation8 + $0x20] sm:$0xff] }
  0x4e   :  { %750 = vmatpush.bf16.msra.mxu1 %v1318_v63  ;;  %v1214_v62 = vor.u32 %v1596_v59, %v1211_v60  ;;  %v1275_v63 = vld [vmem:[#allocation6 + $0x98] sm:$0xf0]  ;;  %v1334_v27 = vor.u32 %v1626_v24, %v1331_v25  ;;  %v1663_v5 = vld [vmem:[#allocation8 + $0x28] sm:$0xff]  ;;  %v1660_v9 = vld [vmem:[#allocation8 + $0x10] sm:$0xff] }
  0x4f   :  { %764 = vmatpush.bf16.msra.mxu2 %v1382_v20  ;;  %v1278_v2 = vor.u32 %v1612_v61, %v1275_v63  ;;  %v1673_v8 = vld [vmem:[#allocation8 + $0x78] sm:$0xff]  ;;  %v1672_v10 = vld [vmem:[#allocation8 + $0x70] sm:$0xff]  ;;  %v1658_v13 = vld [vmem:[#allocation8] sm:$0xff] }
  0x50   :  { %778 = vmatpush.bf16.msra.mxu3 %v1446_v22  ;;  %v1670_v14 = vld [vmem:[#allocation8 + $0x60] sm:$0xff] }
  0x51   :  { %737 = vmatpush.bf16.msra.mxu0 %v1246_v15  ;;  %v1644_v15 = vld [vmem:[#allocation6 + $0x194] sm:$0xf]  ;;  %v1666_v24 = vld [vmem:[#allocation8 + $0x40] sm:$0xff] }
  0x52   :  { %751 = vmatpush.bf16.msra.mxu1 %v1310_v16  ;;  %v144_v16 = vld [vmem:[%s1971_s3] sm:$0xf]  ;;  %v1406_v19 = vor.u32 %v1644_v15, %v1403_v17  ;;  %v1669_v15 = vld [vmem:[#allocation8 + $0x58] sm:$0xff] }
  0x53   :  { %765 = vmatpush.bf16.msra.mxu2 %v1374_v32  ;;  %v146_v20 = vperm.slane %v144_v16, 0  ;;  %v147_v22 = vperm.slane %v144_v16, 1  ;;  %v267_v32 = vstv %s135_s17  ;;  %v148_v35 = vperm.slane %v144_v16, 2  ;;  %v353_v17 = vld [vmem:[%s1973_s5] sm:$0x3]  ;;  %s1455_s5 = sld [smem:[#allocation2 + $0x2]] }
  0x54   :  { %779 = vmatpush.bf16.msra.mxu3 %v1438_v34  ;;  %v149_v39 = vperm.slane %v144_v16, 3 }
  0x55   :  { %738 = vmatpush.bf16.msra.mxu0 %v1238_v26  ;;  %v1642_v26 = vld [vmem:[#allocation6 + $0x184] sm:$0xf] }
  0x56   :  { %752 = vmatpush.bf16.msra.mxu1 %v1302_v28  ;;  %v1395_v28 = vld [vmem:[#allocation6 + $0x188] sm:$0xf0] }
  0x57   :  { %766 = vmatpush.bf16.msra.mxu2 %v1366_v44  ;;  %v1398_v29 = vor.u32 %v1642_v26, %v1395_v28 }
  0x58   :  { %780 = vmatpush.bf16.msra.mxu3 %v1430_v48 }
  0x59   :  { %739 = vmatpush.bf16.msra.mxu0 %v1230_v38 }
  0x5a   :  { %753 = vmatpush.bf16.msra.mxu1 %v1294_v40 }
  0x5b   :  { %767 = vmatpush.bf16.msra.mxu2 %v1358_v56 }
  0x5c   :  { %781 = vmatpush.bf16.msra.mxu3 %v1422_v58 }
  0x5d   :  { %740 = vmatpush.bf16.msra.mxu0 %v1222_v49 }
  0x5e   :  { %754 = vmatpush.bf16.msra.mxu1 %v1286_v52 }
  0x5f   :  { %768 = vmatpush.bf16.msra.mxu2 %v1350_v3 }
  0x60   :  { %782 = vmatpush.bf16.msra.mxu3 %v1414_v7  ;;  %v1661_v7 = vld [vmem:[#allocation8 + $0x18] sm:$0xff] }
  0x61   :  { %741 = vmatpush.bf16.msra.mxu0 %v1214_v62 }
  0x62   :  { %755 = vmatpush.bf16.msra.mxu1 %v1278_v2 }
  0x63   :  { %769 = vmatpush.bf16.msra.mxu2 %v1342_v18  ;;  %v1668_v18 = vld [vmem:[#allocation8 + $0x50] sm:$0xff] }
  0x64   :  { %783 = vmatpush.bf16.msra.mxu3 %v1406_v19 }
  0x65   :  { %742 = vmatpush.bf16.msra.mxu0 %v1206_v11  ;;  %v1659_v11 = vld [vmem:[#allocation8 + $0x8] sm:$0xff] }
  0x66   :  { %756 = vmatpush.bf16.msra.mxu1 %v1270_v12  ;;  %v1671_v12 = vld [vmem:[#allocation8 + $0x68] sm:$0xff] }
  0x67   :  { %770 = vmatpush.bf16.msra.mxu2 %v1334_v27 }
  0x68   :  { %784 = vmatpush.bf16.msra.mxu3 %v1398_v29 }
  0xa5   :  { %v212_v21 = vpop.f32.mrf.mxu0 }
  0xa6   :  { %v226_v23 = vpop.f32.mrf.mxu1  ;;  %v213_v31 = vadd.f32 %v212_v21, %v146_v20  ;;  %v1667_v21 = vld [vmem:[#allocation8 + $0x48] sm:$0xff] }
  0xa7   :  { %v227_v30 = vadd.f32 %v226_v23, %v147_v22 }
  0xa8   :  { %v268_v38 = vmul.f32 %v267_v32, %v213_v31  ;;  %vm259_vm2 = vcmp.gt.f32.partialorder %v213_v31, 0.0 }
  0xa9   :  { %v269_v34 = vmul.f32 %v267_v32, %v227_v30  ;;  %vm260_vm1 = vcmp.gt.f32.partialorder %v227_v30, 0.0 }
  0xaa   :  { %v276_v48 = vsel %vm259_vm2, %v213_v31, %v268_v38 }
  0xab   :  { %v277_v46 = vsel %vm260_vm1, %v227_v30, %v269_v34  ;;  %v795_v34 = vstv %s1198_s18 }
  0xad   :  { %v240_v33 = vpop.f32.mrf.mxu2  ;;  %v214_v37 = vpop.f32.mrf.mxu0 }
  0xae   :  { %v254_v36 = vpop.f32.mrf.mxu3  ;;  %v215_v40 = vadd.f32 %v214_v37, %v146_v20  ;;  %v228_v41 = vpop.f32.mrf.mxu1  ;;  %v241_v44 = vadd.f32 %v240_v33, %v148_v35  ;;  %v355_v20 = vperm.slane %v353_v17, 0 }
  0xaf   :  { %v229_v42 = vadd.f32 %v228_v41, %v147_v22  ;;  %v255_v47 = vadd.f32 %v254_v36, %v149_v39  ;;  %v356_v36 = vperm.slane %v353_v17, 1 }
  0xb0   :  { %vm263_vm3 = vcmp.gt.f32.partialorder %v215_v40, 0.0  ;;  %v272_v43 = vmul.f32 %v267_v32, %v215_v40  ;;  %v270_v55 = vmul.f32 %v267_v32, %v241_v44  ;;  %vm261_vm5 = vcmp.gt.f32.partialorder %v241_v44, 0.0 }
  0xb1   :  { %vm264_vm4 = vcmp.gt.f32.partialorder %v229_v42, 0.0  ;;  %v273_v45 = vmul.f32 %v267_v32, %v229_v42  ;;  %v271_v58 = vmul.f32 %v267_v32, %v255_v47  ;;  %vm262_vm6 = vcmp.gt.f32.partialorder %v255_v47, 0.0 }
  0xb2   :  { %v280_v49 = vsel %vm263_vm3, %v215_v40, %v272_v43  ;;  %v278_v62 = vsel %vm261_vm5, %v241_v44, %v270_v55 }
  0xb3   :  { %v284_v51 = vpack.c.bf16 %v280_v49, %v276_v48  ;;  %v281_v52 = vsel %vm264_vm4, %v229_v42, %v273_v45  ;;  %v279_v1 = vsel %vm262_vm6, %v255_v47, %v271_v58 }
  0xb4   :  { %v285_v54 = vpack.c.bf16 %v281_v52, %v277_v46 }
  0xb5   :  { %v242_v53 = vpop.f32.mrf.mxu2  ;;  %687 = vmatmul.bf16.vlgmr.msrb.gmra.mxu0 %v284_v51 }
  0xb6   :  { %v243_v56 = vadd.f32 %v242_v53, %v148_v35  ;;  %v256_v57 = vpop.f32.mrf.mxu3  ;;  %701 = vmatmul.bf16.vlgmr.msrb.gmra.mxu1 %v285_v54  ;;  %939 = vmatpush.bf16.msrb.mxu0 %v1665_v50 }
  0xb7   :  { %v257_v59 = vadd.f32 %v256_v57, %v149_v39  ;;  %953 = vmatpush.bf16.msrb.mxu1 %v1673_v8  ;;  %v1674_v8 = vld [vmem:[#allocation9] sm:$0xff] }
  0xb8   :  { %vm265_vm7 = vcmp.gt.f32.partialorder %v243_v56, 0.0  ;;  %v274_v60 = vmul.f32 %v267_v32, %v243_v56 }
  0xb9   :  { %vm266_vm8 = vcmp.gt.f32.partialorder %v257_v59, 0.0  ;;  %v275_v61 = vmul.f32 %v267_v32, %v257_v59 }
  0xba   :  { %v282_v63 = vsel %vm265_vm7, %v243_v56, %v274_v60  ;;  %940 = vmatpush.bf16.msrb.mxu0 %v1664_v4  ;;  %v1678_v4 = vld [vmem:[#allocation9 + $0x20] sm:$0xff] }
  0xbb   :  { %v286_v0 = vpack.c.bf16 %v282_v63, %v278_v62  ;;  %v283_v2 = vsel %vm266_vm8, %v257_v59, %v275_v61  ;;  %954 = vmatpush.bf16.msrb.mxu1 %v1672_v10  ;;  %v1688_v10 = vld [vmem:[#allocation11 + $0x30] sm:$0xff] }
  0xbc   :  { %v287_v3 = vpack.c.bf16 %v283_v2, %v279_v1  ;;  %v1681_v1 = vld [vmem:[#allocation9 + $0x38] sm:$0xff]  ;;  %v1680_v2 = vld [vmem:[#allocation9 + $0x30] sm:$0xff] }
  0xbd   :  { %715 = vmatmul.bf16.vlgmr.msrb.gmra.mxu2 %v286_v0 }
  0xbe   :  { %729 = vmatmul.bf16.vlgmr.msrb.gmra.mxu3 %v287_v3  ;;  %941 = vmatpush.bf16.msrb.mxu0 %v1663_v5  ;;  %v1677_v5 = vld [vmem:[#allocation9 + $0x18] sm:$0xff] }
  0xbf   :  { %955 = vmatpush.bf16.msrb.mxu1 %v1671_v12  ;;  %1044 = vmatpush.bf16.msrb.mxu2 %v1681_v1 }
  0xc2   :  { %942 = vmatpush.bf16.msrb.mxu0 %v1662_v6  ;;  %v1676_v6 = vld [vmem:[#allocation9 + $0x10] sm:$0xff] }
  0xc3   :  { %956 = vmatpush.bf16.msrb.mxu1 %v1670_v14  ;;  %1045 = vmatpush.bf16.msrb.mxu2 %v1680_v2  ;;  %v1702_v14 = vld [vmem:[%s1975_s7] ss:$0 sm:$0xff]  ;;  %s1520_s7 = sld [smem:[#allocation2 + $0x3]] }
  0xc5   :  { %743 = vmatmul.bf16.vlgmr.msra.gmra.mxu0 %v284_v51 }
  0xc6   :  { %757 = vmatmul.bf16.vlgmr.msra.gmra.mxu1 %v285_v54  ;;  %943 = vmatpush.bf16.msrb.mxu0 %v1661_v7  ;;  %v1675_v7 = vld [vmem:[#allocation9 + $0x8] sm:$0xff] }
  0xc7   :  { %957 = vmatpush.bf16.msrb.mxu1 %v1669_v15 }
  0xca   :  { %944 = vmatpush.bf16.msrb.mxu0 %v1660_v9  ;;  %v1689_v9 = vld [vmem:[#allocation11 + $0x38] sm:$0xff] }
  0xcb   :  { %958 = vmatpush.bf16.msrb.mxu1 %v1668_v18  ;;  %1134 = vmatpush.bf16.msrb.mxu3 %v1689_v9 }
  0xcd   :  { %771 = vmatmul.bf16.vlgmr.msra.gmra.mxu2 %v286_v0 }
  0xce   :  { %785 = vmatmul.bf16.vlgmr.msra.gmra.mxu3 %v287_v3  ;;  %945 = vmatpush.bf16.msrb.mxu0 %v1659_v11  ;;  %v1679_v3 = vld [vmem:[#allocation9 + $0x28] sm:$0xff] }
  0xcf   :  { %959 = vmatpush.bf16.msrb.mxu1 %v1667_v21  ;;  %1046 = vmatpush.bf16.msrb.mxu2 %v1679_v3  ;;  %v1687_v11 = vld [vmem:[#allocation11 + $0x28] sm:$0xff] }
  0xd0   :  { %1135 = vmatpush.bf16.msrb.mxu3 %v1688_v10 }
  0xd2   :  { %946 = vmatpush.bf16.msrb.mxu0 %v1658_v13  ;;  %v1686_v13 = vld [vmem:[#allocation11 + $0x20] sm:$0xff] }
  0xd3   :  { %960 = vmatpush.bf16.msrb.mxu1 %v1666_v24  ;;  %1047 = vmatpush.bf16.msrb.mxu2 %v1678_v4 }
  0xd4   :  { %1136 = vmatpush.bf16.msrb.mxu3 %v1687_v11 }
  0xd7   :  { %1048 = vmatpush.bf16.msrb.mxu2 %v1677_v5 }
  0xd8   :  { %1137 = vmatpush.bf16.msrb.mxu3 %v1686_v13 }
  0xdb   :  { %1049 = vmatpush.bf16.msrb.mxu2 %v1676_v6 }
  0xdf   :  { %1050 = vmatpush.bf16.msrb.mxu2 %v1675_v7 }
  0xe3   :  { %1051 = vmatpush.bf16.msrb.mxu2 %v1674_v8 }
 0x132   :  { %v688_v16 = vpop.f32.mrf.mxu0 }
 0x133   :  { %v702_v19 = vpop.f32.mrf.mxu1  ;;  %v689_v23 = vadd.f32 %v688_v16, %v355_v20 }
 0x135   :  { %v703_v26 = vadd.f32 %v702_v19, %v689_v23  ;;  %v969_v19 = vstv %s1455_s5 }
 0x13a   :  { %v690_v22 = vpop.f32.mrf.mxu0 }
 0x13b   :  { %v704_v28 = vpop.f32.mrf.mxu1  ;;  %v691_v29 = vadd.f32 %v690_v22, %v355_v20 }
 0x13d   :  { %v705_v32 = vadd.f32 %v704_v28, %v691_v29  ;;  %v1685_v28 = vld [vmem:[#allocation11 + $0x18] sm:$0xff]  ;;  %v1684_v29 = vld [vmem:[#allocation11 + $0x10] sm:$0xff] }
 0x13e   :  { %1138 = vmatpush.bf16.msrb.mxu3 %v1685_v28 }
 0x140   :  { %v716_v25 = vpop.f32.mrf.mxu2 }
 0x141   :  { %v730_v27 = vpop.f32.mrf.mxu3  ;;  %v717_v30 = vadd.f32 %v716_v25, %v703_v26 }
 0x142   :  { %v744_v31 = vpop.f32.mrf.mxu0  ;;  %1139 = vmatpush.bf16.msrb.mxu3 %v1684_v29 }
 0x143   :  { %v731_v33 = vadd.f32 %v730_v27, %v717_v30  ;;  %v758_v41 = vpop.f32.mrf.mxu1  ;;  %v745_v42 = vadd.f32 %v744_v31, %v356_v36  ;;  %v1683_v30 = vld [vmem:[#allocation11 + $0x8] sm:$0xff]  ;;  %v1682_v31 = vld [vmem:[#allocation11] sm:$0xff] }
 0x145   :  { %v796_v39 = vmul.f32 %v795_v34, %v731_v33  ;;  %vm791_vm9 = vcmp.gt.f32.partialorder %v731_v33, 0.0  ;;  %v759_v49 = vadd.f32 %v758_v41, %v745_v42 }
 0x146   :  { %1140 = vmatpush.bf16.msrb.mxu3 %v1683_v30 }
 0x147   :  { %v800_v44 = vsel %vm791_vm9, %v731_v33, %v796_v39  ;;  %v1703_v33 = vld [vmem:[%s1977_s9] ss:$0 sm:$0xff] }
 0x148   :  { %v718_v35 = vpop.f32.mrf.mxu2 }
 0x149   :  { %v719_v37 = vadd.f32 %v718_v35, %v705_v32  ;;  %v732_v38 = vpop.f32.mrf.mxu3  ;;  %v1060_v35 = vstv %s1520_s7 }
 0x14a   :  { %v746_v47 = vpop.f32.mrf.mxu0  ;;  %1141 = vmatpush.bf16.msrb.mxu3 %v1682_v31 }
 0x14b   :  { %v733_v40 = vadd.f32 %v732_v38, %v719_v37  ;;  %v747_v51 = vadd.f32 %v746_v47, %v356_v36  ;;  %v760_v53 = vpop.f32.mrf.mxu1 }
 0x14d   :  { %vm793_vm10 = vcmp.gt.f32.partialorder %v733_v40, 0.0  ;;  %v798_v43 = vmul.f32 %v795_v34, %v733_v40  ;;  %v761_v54 = vadd.f32 %v760_v53, %v747_v51 }
 0x14f   :  { %v802_v45 = vsel %vm793_vm10, %v733_v40, %v798_v43  ;;  %v1704_v43 = vld [vmem:[%s1979_s11] ss:$0 sm:$0xff] }
 0x150   :  { %v804_v46 = vpack.c.bf16 %v802_v45, %v800_v44  ;;  %v772_v48 = vpop.f32.mrf.mxu2 }
 0x151   :  { %v786_v50 = vpop.f32.mrf.mxu3  ;;  %v773_v52 = vadd.f32 %v772_v48, %v759_v49 }
 0x152   :  { %947 = vmatmul.bf16.vlgmr.msrb.gmra.mxu0 %v804_v46 }
 0x153   :  { %v787_v55 = vadd.f32 %v786_v50, %v773_v52 }
 0x155   :  { %v797_v59 = vmul.f32 %v795_v34, %v787_v55  ;;  %vm792_vm11 = vcmp.gt.f32.partialorder %v787_v55, 0.0 }
 0x157   :  { %v801_v62 = vsel %vm792_vm11, %v787_v55, %v797_v59 }
 0x158   :  { %v774_v56 = vpop.f32.mrf.mxu2 }
 0x159   :  { %v775_v57 = vadd.f32 %v774_v56, %v761_v54  ;;  %v788_v58 = vpop.f32.mrf.mxu3 }
 0x15b   :  { %v789_v60 = vadd.f32 %v788_v58, %v775_v57 }
 0x15d   :  { %vm794_vm12 = vcmp.gt.f32.partialorder %v789_v60, 0.0  ;;  %v799_v61 = vmul.f32 %v795_v34, %v789_v60 }
 0x15f   :  { %v803_v63 = vsel %vm794_vm12, %v789_v60, %v799_v61 }
 0x160   :  { %v805_v0 = vpack.c.bf16 %v803_v63, %v801_v62 }
 0x162   :  { %961 = vmatmul.bf16.vlgmr.msrb.gmra.mxu1 %v805_v0 }
 0x1cf   :  { %v948_v12 = vpop.f32.mrf.mxu0 }
 0x1d0   :  { %v949_v16 = vadd.f32 %v1702_v14, %v948_v12 }
 0x1d7   :  { %v950_v17 = vpop.f32.mrf.mxu0 }
 0x1d8   :  { %v951_v20 = vadd.f32 %v1702_v14, %v950_v17 }
 0x1df   :  { %v962_v15 = vpop.f32.mrf.mxu1 }
 0x1e0   :  { %v963_v18 = vadd.f32 %v962_v15, %v949_v16 }
 0x1e2   :  { %v970_v22 = vmul.f32 %v969_v19, %v963_v18  ;;  %vm967_vm13 = vcmp.gt.f32.partialorder %v963_v18, 0.0 }
 0x1e4   :  { %v972_v25 = vsel %vm967_vm13, %v963_v18, %v970_v22 }
 0x1e7   :  { %v964_v21 = vpop.f32.mrf.mxu1 }
 0x1e8   :  { %v965_v23 = vadd.f32 %v964_v21, %v951_v20 }
 0x1ea   :  { %vm968_vm14 = vcmp.gt.f32.partialorder %v965_v23, 0.0  ;;  %v971_v24 = vmul.f32 %v969_v19, %v965_v23 }
 0x1ec   :  { %v973_v26 = vsel %vm968_vm14, %v965_v23, %v971_v24 }
 0x1ed   :  { %v974_v27 = vpack.c.bf16 %v973_v26, %v972_v25 }
 0x1ef   :  { %1052 = vmatmul.bf16.vlgmr.msrb.gmra.mxu2 %v974_v27 }
 0x272   :  { %v1053_v32 = vpop.f32.mrf.mxu2 }
 0x273   :  { %v1054_v34 = vadd.f32 %v1703_v33, %v1053_v32 }
 0x275   :  { %v1061_v37 = vmul.f32 %v1060_v35, %v1054_v34  ;;  %vm1058_vm15 = vcmp.gt.f32.partialorder %v1054_v34, 0.0 }
 0x277   :  { %v1063_v40 = vsel %vm1058_vm15, %v1054_v34, %v1061_v37 }
 0x27a   :  { %v1055_v36 = vpop.f32.mrf.mxu2 }
 0x27b   :  { %v1056_v38 = vadd.f32 %v1703_v33, %v1055_v36 }
 0x27d   :  { %vm1059_vm0 = vcmp.gt.f32.partialorder %v1056_v38, 0.0  ;;  %v1062_v39 = vmul.f32 %v1060_v35, %v1056_v38 }
 0x27f   :  { %v1064_v41 = vsel %vm1059_vm0, %v1056_v38, %v1062_v39 }
 0x280   :  { %v1065_v42 = vpack.c.bf16 %v1064_v41, %v1063_v40 }
 0x282   :  { %1142 = vmatmul.bf16.vlgmr.msrb.gmra.mxu3 %v1065_v42 }
 0x305   :  { %v1143_v44 = vpop.f32.mrf.mxu3 }
 0x306   :  { %v1144_v45 = vadd.f32 %v1704_v43, %v1143_v44 }
 0x308   :  { %1148 = vst [vmem:[%s1980_s12] sm:$0xff] %v1144_v45 }
 0x30d   :  { %v1145_v46 = vpop.f32.mrf.mxu3 }
 0x30e   :  { %v1146_v47 = vadd.f32 %v1704_v43, %v1145_v46 }
 0x310   :  { %1149 = vst [vmem:[%s1980_s12 + $0x8] sm:$0xff] %v1146_v47 }
 0x311   :  { %1154 = vsyncpa [#allocation3], 1 }
 0x312   :  { %1155 = vsyncpa [#allocation7], 1 }
 0x313   :  { %1156 = vsyncpa [#allocation10], 1 }
 0x314   :  { %1157 = vsyncpa [#allocation4], 1 }

</bundles_post_ra>
